<compile_context>
chip_gen: v7x
topology: tpu7x:2x2x1
jax: 0.10.0
libtpu: 0.0.40
codegen_flags: <defaults>
</compile_context>

<pallas_src>
import jax
import jax.numpy as jnp
from jax.experimental import pallas as pl
from jax.experimental.pallas import tpu as pltpu

COUT = 8          # Conv2d(1, 8, 1) output channels
P = 9             # flattened 3x3 padded spatial map
CENTER = 4        # flat index of the (1, 1) centre pixel of the 3x3 map
ROWS = COUT * P   # 72 output rows per sample (divisible by 8)


def _fused_kernel(x_ref, prm_ref, out_ref):
    # x_ref:   (1, TN)     one input scalar per sample (lanes = samples)
    # prm_ref: (ROWS, 4)   per-row constants: [w1, b1, w2*center_mask, b2]
    # out_ref: (ROWS, TN)  row = channel*9 + pixel, lane = sample
    x = x_ref[...]
    prm = prm_ref[...]
    w1 = prm[:, 0:1]
    b1 = prm[:, 1:2]
    w2c = prm[:, 2:3]   # already masked to the centre pixel
    b2 = prm[:, 3:4]

    # conv1 + ReLU at the centre pixel; at the three zero-padded pixels inside
    # the 2x2 maxpool window conv1+ReLU reduces to relu(b1).
    y1c = jnp.maximum(w1 * x + b1, 0.0)             # (ROWS, TN)
    pool = jnp.maximum(y1c, jnp.maximum(b1, 0.0))   # MaxPool2d(2) over the 3x3 map

    # conv2 (no activation): w2*x at the centre pixel, b2 everywhere.
    y3 = w2c * x + b2

    # v1 + v2 + v3 == 2*pool + y3 (pool broadcast over the 3x3 map); final ReLU.
    out_ref[...] = jnp.maximum(2.0 * pool + y3, 0.0)


def model_forward(x, w1, b1, w2, b2):
    """x: (N, 1, H, W) NCHW (PyTorch convention). Returns (N, 8, H+2, W+2)."""
    n, cin, h, w = x.shape
    assert cin == 1, "Conv2d(1, 8, ...) expects a single input channel"
    hp, wp = h + 2, w + 2
    assert (hp // 2 == 1) and (wp // 2 == 1), (
        "The PyTorch forward only broadcasts when the maxpooled spatial size is 1 "
        "(i.e. H == W == 1)")

    # Lane-dense tiling: lanes = samples, padded up to a multiple of the tile.
    tn = min(1024, ((n + 127) // 128) * 128)
    n_pad = ((n + tn - 1) // tn) * tn
    grid_n = n_pad // tn

    # One f32 lane per sample -- no channel replication in the wrapper.
    x_lanes = jnp.zeros((1, n_pad), jnp.float32).at[0, :n].set(
        x.reshape(n).astype(jnp.float32))

    # N-independent per-row constant table: [w1, b1, w2*center_mask, b2].
    mask_c = (jnp.arange(P) == CENTER).astype(jnp.float32)                   # (9,)
    w1r = jnp.repeat(w1.reshape(COUT).astype(jnp.float32), P)                # (72,)
    b1r = jnp.repeat(b1.reshape(COUT).astype(jnp.float32), P)
    w2r = jnp.repeat(w2.reshape(COUT).astype(jnp.float32), P) * jnp.tile(mask_c, COUT)
    b2r = jnp.repeat(b2.reshape(COUT).astype(jnp.float32), P)
    params = jnp.stack([w1r, b1r, w2r, b2r], axis=-1)                        # (72, 4)

    out = pl.pallas_call(
        _fused_kernel,
        out_shape=jax.ShapeDtypeStruct((ROWS, n_pad), jnp.float32),
        grid=(grid_n,),
        in_specs=[
            pl.BlockSpec((1, tn), lambda i: (0, i)),       # x: per-tile lanes
            pl.BlockSpec((ROWS, 4), lambda i: (0, 0)),     # params: fetched once
        ],
        out_specs=pl.BlockSpec((ROWS, tn), lambda i: (0, i)),
        compiler_params=pltpu.CompilerParams(
            dimension_semantics=("parallel",)),
    )(x_lanes, params)

    # (72, Npad) -> (N, 8, 3, 3)
    out = out[:, :n].reshape(COUT, P, n).transpose(2, 0, 1)
    return out.reshape(n, COUT, hp, wp)


def ref_forward(x, w1, b1, w2, b2):
    """Pure-JAX reference mirroring the PyTorch forward (for validation)."""
    xpad = jnp.pad(x[:, 0].astype(jnp.float32), ((0, 0), (1, 1), (1, 1)))    # (N, 3, 3)
    w1r = w1.reshape(1, COUT, 1, 1); b1r = b1.reshape(1, COUT, 1, 1)
    w2r = w2.reshape(1, COUT, 1, 1); b2r = b2.reshape(1, COUT, 1, 1)
    y1 = jnp.maximum(xpad[:, None] * w1r + b1r, 0.0)                 # conv1 + relu
    pool = jnp.max(y1[:, :, 0:2, 0:2], axis=(2, 3), keepdims=True)   # maxpool2d(2)
    y3 = xpad[:, None] * w2r + b2r                                   # conv2
    return jnp.maximum(pool + pool + y3, 0.0)


if __name__ == "__main__":
    key = jax.random.PRNGKey(0)
    kx, k1, k2, k3, k4 = jax.random.split(key, 5)
    # Conv2d(1, 8, 1) weight shape = (8, 1, 1, 1), bias shape = (8,).
    w1 = jax.random.normal(k1, (COUT, 1, 1, 1), jnp.float32) * 0.5
    b1 = jax.random.normal(k2, (COUT,), jnp.float32) * 0.1
    w2 = jax.random.normal(k3, (COUT, 1, 1, 1), jnp.float32) * 0.5
    b2 = jax.random.normal(k4, (COUT,), jnp.float32) * 0.1

    # N=2: single-tile path; N=200: multi-tile (grid > 1) path.
    for N in (2, 200):
        x = jax.random.normal(kx, (N, 1, 1, 1), jnp.float32)
        out = jax.block_until_ready(model_forward(x, w1, b1, w2, b2))
        ref = ref_forward(x, w1, b1, w2, b2)
        assert out.shape == (N, COUT, 3, 3), out.shape
        assert jnp.allclose(out, ref, atol=1e-5, rtol=1e-5)
    print("KERNEL_OK")
</pallas_src>

<mosaic_0001>
module attributes {stable_mosaic.version = 11 : i64} {
  func.func @_fused_kernel(%arg0: i32, %arg1: memref<1x128xf32, #tpu.memory_space<vmem>>, %arg2: memref<72x4xf32, #tpu.memory_space<vmem>>, %arg3: memref<72x128xf32, #tpu.memory_space<vmem>>) attributes {dimension_semantics = [#tpu.dimension_semantics<parallel>], iteration_bounds = array<i64: 1>, scalar_prefetch = 0 : i64, scratch_operands = 0 : i64, tpu.core_type = #tpu.core_type<tc>, window_params = [{transform_indices = @transform_0, window_bounds = array<i64: 1, 128>}, {pipeline_mode = #tpu.pipeline_mode<synchronous>, transform_indices = @transform_1, window_bounds = array<i64: 72, 4>}, {transform_indices = @transform_2, window_bounds = array<i64: 72, 128>}]} {
    %c0 = arith.constant 0 : index
    %c0_0 = arith.constant 0 : index
    %0 = vector.load %arg1[%c0, %c0_0] : memref<1x128xf32, #tpu.memory_space<vmem>>, vector<1x128xf32>
    %c0_1 = arith.constant 0 : index
    %c0_2 = arith.constant 0 : index
    %1 = vector.load %arg2[%c0_1, %c0_2] : memref<72x4xf32, #tpu.memory_space<vmem>>, vector<72x4xf32>
    %2 = vector.extract_strided_slice %1 {offsets = [0, 0], sizes = [72, 1], strides = [1, 1]} : vector<72x4xf32> to vector<72x1xf32>
    %3 = vector.extract_strided_slice %1 {offsets = [0, 1], sizes = [72, 1], strides = [1, 1]} : vector<72x4xf32> to vector<72x1xf32>
    %4 = vector.extract_strided_slice %1 {offsets = [0, 2], sizes = [72, 1], strides = [1, 1]} : vector<72x4xf32> to vector<72x1xf32>
    %5 = vector.extract_strided_slice %1 {offsets = [0, 3], sizes = [72, 1], strides = [1, 1]} : vector<72x4xf32> to vector<72x1xf32>
    %6 = vector.broadcast %2 : vector<72x1xf32> to vector<72x128xf32>
    %7 = vector.broadcast %0 : vector<1x128xf32> to vector<72x128xf32>
    %8 = arith.mulf %6, %7 : vector<72x128xf32>
    %9 = vector.broadcast %3 : vector<72x1xf32> to vector<72x128xf32>
    %10 = arith.addf %8, %9 : vector<72x128xf32>
    %cst = arith.constant 0.000000e+00 : f32
    %11 = vector.broadcast %cst : f32 to vector<72x128xf32>
    %12 = arith.maximumf %10, %11 : vector<72x128xf32>
    %cst_3 = arith.constant 0.000000e+00 : f32
    %13 = vector.broadcast %cst_3 : f32 to vector<72x1xf32>
    %14 = arith.maximumf %3, %13 : vector<72x1xf32>
    %15 = vector.broadcast %14 : vector<72x1xf32> to vector<72x128xf32>
    %16 = arith.maximumf %12, %15 : vector<72x128xf32>
    %17 = vector.broadcast %4 : vector<72x1xf32> to vector<72x128xf32>
    %18 = vector.broadcast %0 : vector<1x128xf32> to vector<72x128xf32>
    %19 = arith.mulf %17, %18 : vector<72x128xf32>
    %20 = vector.broadcast %5 : vector<72x1xf32> to vector<72x128xf32>
    %21 = arith.addf %19, %20 : vector<72x128xf32>
    %cst_4 = arith.constant 2.000000e+00 : f32
    %22 = vector.broadcast %cst_4 : f32 to vector<72x128xf32>
    %23 = arith.mulf %22, %16 : vector<72x128xf32>
    %24 = arith.addf %23, %21 : vector<72x128xf32>
    %cst_5 = arith.constant 0.000000e+00 : f32
    %25 = vector.broadcast %cst_5 : f32 to vector<72x128xf32>
    %26 = arith.maximumf %24, %25 : vector<72x128xf32>
    %c0_6 = arith.constant 0 : index
    %c0_7 = arith.constant 0 : index
    %27 = vector.load %arg3[%c0_6, %c0_7] : memref<72x128xf32, #tpu.memory_space<vmem>>, vector<72x128xf32>
    tpu.vector_store %arg3[%c0_6, %c0_7], %26 {strides = array<i32>} : memref<72x128xf32, #tpu.memory_space<vmem>>, vector<72x128xf32>,
    return
  }
  func.func @transform_0(%arg0: i32) -> (i32, i32) {
    %c0_i32 = arith.constant 0 : i32
    %c0_i32_0 = arith.constant 0 : i32
    return %c0_i32, %arg0 : i32, i32
  }
  func.func @transform_1(%arg0: i32) -> (i32, i32) {
    %c0_i32 = arith.constant 0 : i32
    %c0_i32_0 = arith.constant 0 : i32
    %c0_i32_1 = arith.constant 0 : i32
    return %c0_i32, %c0_i32_0 : i32, i32
  }
  func.func @transform_2(%arg0: i32) -> (i32, i32) {
    %c0_i32 = arith.constant 0 : i32
    %c0_i32_0 = arith.constant 0 : i32
    return %c0_i32, %arg0 : i32, i32
  }
}

</mosaic_0001>

<bundles_post_ra>
// kernel: tpu_custom_call.1
= control target key start
LH: loop header
LB: loop body
LE: loop exit
PB: predicated region body
PF: predicated region fallthrough
CT: control target
= control target key end

     0   :  { %v381_v2 = vmov 0   ;;  %s509_s0 = inlined_call_operand.vmem [shape: f32[1,128], index: 0, kind: input, shape index: {}]   ;;  %s510_s1 = inlined_call_operand.vmem [shape: f32[72,4], index: 1, kind: input, shape index: {}]   ;;  %s511_s2 = inlined_call_operand.hbm [shape: f32[72,128], index: 2, kind: output, shape index: {}]  }
   0x1   :  { %v406_v0 = vld [vmem:[%s510_s1 + $0x10] sm:$0xff]  ;;  %v411_v1 = vld [vmem:[%s510_s1] sm:$0xff]  ;;  %350 = vset.pattern.permute.xlu1 %v381_v2  ;;  %349 = vset.pattern.permute.xlu0 %v381_v2  ;;  %v16_v3 = vld [vmem:[%s510_s1 + $0x18] sm:$0xff] }
   0x2   :  { %34 = vperm.xlu1 %350, %v406_v0   ;;  %24 = vperm.xlu0 %349, %v411_v1   ;;  %v14_v4 = vld [vmem:[%s510_s1 + $0x8] sm:$0xff] }
   0x3   :  { %7 = vsyncpa [#allocation3], 0  ;;  %v18_v5 = vld [vmem:[%s510_s1 + $0x28] sm:$0xff]  ;;  %v17_v6 = vld [vmem:[%s510_s1 + $0x20] sm:$0xff]  ;;  %v382_v10 = vmov 1   ;;  %v137_v11 = vmax.f32 %v14_v4, 0.0 }
   0x4   :  { %v20_v7 = vld [vmem:[%s510_s1 + $0x38] sm:$0xff]  ;;  %v19_v8 = vld [vmem:[%s510_s1 + $0x30] sm:$0xff]  ;;  %v21_v9 = vld [vmem:[%s510_s1 + $0x40] sm:$0xff]  ;;  %v136_v12 = vmax.f32 %v411_v1, 0.0  ;;  %v139_v13 = vmax.f32 %v16_v3, 0.0  ;;  %v138_v14 = vmax.f32 %v406_v0, 0.0 }
   0x5   :  { %v141_v15 = vmax.f32 %v18_v5, 0.0  ;;  %v140_v16 = vmax.f32 %v17_v6, 0.0  ;;  %v143_v17 = vmax.f32 %v20_v7, 0.0  ;;  %v142_v18 = vmax.f32 %v19_v8, 0.0  ;;  %v461_v52 = vld [vmem:[%s509_s0] ss:$0 sm:$0xff] }
   0x6   :  { %39 = vperm.xlu1 %350, %v16_v3   ;;  %29 = vperm.xlu0 %349, %v14_v4   ;;  %v144_v19 = vmax.f32 %v21_v9, 0.0  ;;  %v383_v20 = vmov 2   ;;  %v384_v21 = vmov 3   ;;  %s385_s0 = smov [#allocation2]  }
   0x7   :  { %s330_s28 = sshll.u32 %s385_s0, 4  ;;  %s331_s28 = int_to_ptr.vmem [resolvable:$true] %s330_s28 }
   0x8   :  { %s357_s29 = scalar_lea.vmem %s331_s28, 1152  ;;  %p362_p1 = scmp.lt.s32.totalorder %s331_s28, %s331_s28 }
   0x9   :  { %p358_p0 = scmp.ne.s32.totalorder %s331_s28, %s357_s29  ;;  %p363_p2 = scmp.lt.s32.totalorder %s357_s29, %s357_s29 }
   0xa   :  { %49 = vperm.xlu1 %350, %v18_v5   ;;  %44 = vperm.xlu0 %349, %v17_v6  }
   0xb   :  { %p364_p3 = por %p363_p2, %p362_p1 }
   0xd   :  { %p365_p4 = pnand %p364_p3, %p358_p0 }
   0xe   :  { %59 = vperm.xlu1 %350, %v20_v7   ;;  %54 = vperm.xlu0 %349, %v19_v8  }
  0x12   :  { %351 = vset.pattern.permute.xlu1 %v382_v10  ;;  %64 = vperm.xlu0 %349, %v21_v9  }
  0x13   :  { %83 = vperm.xlu1 %351, %v411_v1  }
  0x16   :  { %352 = vset.pattern.permute.xlu0 %v382_v10 }
  0x17   :  { %91 = vperm.xlu1 %351, %v406_v0   ;;  %87 = vperm.xlu0 %352, %v14_v4  }
  0x1b   :  { %95 = vperm.xlu1 %351, %v16_v3   ;;  %99 = vperm.xlu0 %352, %v17_v6  }
  0x1f   :  { %103 = vperm.xlu1 %351, %v18_v5   ;;  %107 = vperm.xlu0 %352, %v19_v8  }
  0x23   :  { %111 = vperm.xlu1 %351, %v20_v7   ;;  %115 = vperm.xlu0 %352, %v21_v9  }
  0x27   :  { %152 = vperm.xlu0 %352, %v137_v11   ;;  %147 = vperm.xlu1 %351, %v136_v12  }
  0x2b   :  { %162 = vperm.xlu0 %352, %v139_v13   ;;  %157 = vperm.xlu1 %351, %v138_v14  }
  0x2f   :  { %172 = vperm.xlu0 %352, %v141_v15   ;;  %167 = vperm.xlu1 %351, %v140_v16  }
  0x33   :  { %182 = vperm.xlu0 %352, %v143_v17   ;;  %177 = vperm.xlu1 %351, %v142_v18  }
  0x37   :  { %353 = vset.pattern.permute.xlu0 %v383_v20  ;;  %187 = vperm.xlu1 %351, %v144_v19  }
  0x38   :  { %200 = vperm.xlu0 %353, %v411_v1  }
  0x3b   :  { %354 = vset.pattern.permute.xlu1 %v383_v20 }
  0x3c   :  { %212 = vperm.xlu0 %353, %v16_v3   ;;  %204 = vperm.xlu1 %354, %v14_v4  }
  0x40   :  { %220 = vperm.xlu0 %353, %v18_v5   ;;  %208 = vperm.xlu1 %354, %v406_v0  }
  0x44   :  { %228 = vperm.xlu0 %353, %v20_v7   ;;  %216 = vperm.xlu1 %354, %v17_v6  }
  0x48   :  { %355 = vset.pattern.permute.xlu0 %v384_v21  ;;  %224 = vperm.xlu1 %354, %v19_v8  }
  0x49   :  { %245 = vperm.xlu0 %355, %v411_v1  }
  0x4c   :  { %232 = vperm.xlu1 %354, %v21_v9  }
  0x4d   :  { %257 = vperm.xlu0 %355, %v16_v3  }
  0x50   :  { %356 = vset.pattern.permute.xlu1 %v384_v21 }
  0x51   :  { %265 = vperm.xlu0 %355, %v18_v5   ;;  %249 = vperm.xlu1 %356, %v14_v4  }
  0x55   :  { %273 = vperm.xlu0 %355, %v20_v7   ;;  %253 = vperm.xlu1 %356, %v406_v0  }
  0x59   :  { %261 = vperm.xlu1 %356, %v17_v6  }
  0x5d   :  { %269 = vperm.xlu1 %356, %v19_v8  }
  0x61   :  { %277 = vperm.xlu1 %356, %v21_v9  }
  0x81   :  { %v35_v22 = vpop.permute.xlu1 %34  ;;  %v25_v23 = vpop.permute.xlu0 %24 }
  0x82   :  { %v73_v53 = vmul.f32 %v461_v52, %v25_v23  ;;  %v75_v6 = vmul.f32 %v461_v52, %v35_v22 }
  0x85   :  { %v40_v24 = vpop.permute.xlu1 %39  ;;  %v30_v25 = vpop.permute.xlu0 %29 }
  0x86   :  { %v76_v57 = vmul.f32 %v461_v52, %v40_v24  ;;  %v74_v62 = vmul.f32 %v461_v52, %v30_v25 }
  0x89   :  { %v50_v26 = vpop.permute.xlu1 %49  ;;  %v45_v27 = vpop.permute.xlu0 %44 }
  0x8a   :  { %v78_v63 = vmul.f32 %v461_v52, %v50_v26  ;;  %v77_v19 = vmul.f32 %v461_v52, %v45_v27 }
  0x8d   :  { %v60_v28 = vpop.permute.xlu1 %59  ;;  %v444_v29 = vpop.permute.xlu0 %54 }
  0x8e   :  { %v80_v7 = vmul.f32 %v461_v52, %v60_v28 }
  0x91   :  { %v446_v30 = vpop.permute.xlu0 %64 }
  0x92   :  { %v84_v31 = vpop.permute.xlu1 %83 }
  0x93   :  { %v118_v54 = vadd.f32 %v84_v31, %v73_v53 }
  0x95   :  { %v127_v58 = vmax.f32 %v118_v54, 0.0 }
  0x96   :  { %v92_v32 = vpop.permute.xlu1 %91  ;;  %v88_v33 = vpop.permute.xlu0 %87 }
  0x97   :  { %v119_v1 = vadd.f32 %v88_v33, %v74_v62  ;;  %v120_v12 = vadd.f32 %v92_v32, %v75_v6 }
  0x99   :  { %v128_v13 = vmax.f32 %v119_v1, 0.0  ;;  %v129_v26 = vmax.f32 %v120_v12, 0.0 }
  0x9a   :  { %v96_v34 = vpop.permute.xlu1 %95  ;;  %v100_v35 = vpop.permute.xlu0 %99 }
  0x9b   :  { %v121_v59 = vadd.f32 %v96_v34, %v76_v57  ;;  %v122_v28 = vadd.f32 %v100_v35, %v77_v19 }
  0x9d   :  { %v130_v2 = vmax.f32 %v121_v59, 0.0  ;;  %v131_v35 = vmax.f32 %v122_v28, 0.0 }
  0x9e   :  { %v104_v36 = vpop.permute.xlu1 %103  ;;  %v448_v37 = vpop.permute.xlu0 %107 }
  0x9f   :  { %v123_v3 = vadd.f32 %v104_v36, %v78_v63  ;;  %v79_v36 = vmul.f32 %v461_v52, %v444_v29  ;;  %v81_v29 = vmul.f32 %v461_v52, %v446_v30 }
  0xa1   :  { %v132_v15 = vmax.f32 %v123_v3, 0.0  ;;  %v124_v54 = vadd.f32 %v448_v37, %v79_v36 }
  0xa2   :  { %v112_v38 = vpop.permute.xlu1 %111  ;;  %v450_v39 = vpop.permute.xlu0 %115 }
  0xa3   :  { %v125_v14 = vadd.f32 %v112_v38, %v80_v7  ;;  %v133_v3 = vmax.f32 %v124_v54, 0.0 }
  0xa5   :  { %v134_v31 = vmax.f32 %v125_v14, 0.0 }
  0xa6   :  { %v153_v40 = vpop.permute.xlu0 %152  ;;  %v148_v41 = vpop.permute.xlu1 %147 }
  0xa7   :  { %v190_v0 = vmax.f32 %v127_v58, %v148_v41  ;;  %v191_v20 = vmax.f32 %v128_v13, %v153_v40 }
  0xa9   :  { %v289_v9 = vmul.f32 2.0, %v190_v0  ;;  %v290_v38 = vmul.f32 2.0, %v191_v20 }
  0xaa   :  { %v163_v42 = vpop.permute.xlu0 %162  ;;  %v158_v43 = vpop.permute.xlu1 %157 }
  0xab   :  { %v193_v10 = vmax.f32 %v130_v2, %v163_v42  ;;  %v192_v27 = vmax.f32 %v129_v26, %v158_v43 }
  0xad   :  { %v292_v22 = vmul.f32 2.0, %v193_v10  ;;  %v291_v43 = vmul.f32 2.0, %v192_v27 }
  0xae   :  { %v173_v44 = vpop.permute.xlu0 %172  ;;  %v452_v45 = vpop.permute.xlu1 %167 }
  0xaf   :  { %v195_v23 = vmax.f32 %v132_v15, %v173_v44 }
  0xb1   :  { %v294_v44 = vmul.f32 2.0, %v195_v23 }
  0xb2   :  { %v183_v46 = vpop.permute.xlu0 %182  ;;  %v454_v47 = vpop.permute.xlu1 %177 }
  0xb3   :  { %v197_v40 = vmax.f32 %v134_v31, %v183_v46  ;;  %v194_v46 = vmax.f32 %v131_v35, %v452_v45  ;;  %v196_v45 = vmax.f32 %v133_v3, %v454_v47 }
  0xb5   :  { %v296_v59 = vmul.f32 2.0, %v197_v40  ;;  %v293_v6 = vmul.f32 2.0, %v194_v46 }
  0xb6   :  { %v456_v48 = vpop.permute.xlu1 %187 }
  0xb7   :  { %v201_v49 = vpop.permute.xlu0 %200 }
  0xb8   :  { %v235_v4 = vmul.f32 %v461_v52, %v201_v49 }
  0xbb   :  { %v213_v50 = vpop.permute.xlu0 %212  ;;  %v205_v51 = vpop.permute.xlu1 %204 }
  0xbc   :  { %v238_v16 = vmul.f32 %v461_v52, %v213_v50  ;;  %v236_v32 = vmul.f32 %v461_v52, %v205_v51 }
  0xbf   :  { %v221_v55 = vpop.permute.xlu0 %220  ;;  %v209_v56 = vpop.permute.xlu1 %208 }
  0xc0   :  { %v240_v33 = vmul.f32 %v461_v52, %v221_v55  ;;  %v237_v51 = vmul.f32 %v461_v52, %v209_v56  ;;  %v126_v56 = vadd.f32 %v450_v39, %v81_v29 }
  0xc3   :  { %v229_v60 = vpop.permute.xlu0 %228  ;;  %v465_v61 = vpop.permute.xlu1 %216 }
  0xc4   :  { %v242_v55 = vmul.f32 %v461_v52, %v229_v60  ;;  %v239_v60 = vmul.f32 %v461_v52, %v465_v61  ;;  %v295_v61 = vmul.f32 2.0, %v196_v45 }
  0xc7   :  { %v470_v5 = vpop.permute.xlu1 %224 }
  0xc8   :  { %v246_v8 = vpop.permute.xlu0 %245  ;;  %v241_v12 = vmul.f32 %v461_v52, %v470_v5 }
  0xc9   :  { %v280_v11 = vadd.f32 %v246_v8, %v235_v4 }
  0xcb   :  { %v298_v17 = vadd.f32 %v289_v9, %v280_v11  ;;  %v475_v18 = vpop.permute.xlu1 %232  ;;  %v135_v11 = vmax.f32 %v126_v56, 0.0 }
  0xcc   :  { %v258_v21 = vpop.permute.xlu0 %257 }
  0xcd   :  { %v307_v24 = vmax.f32 %v298_v17, 0.0  ;;  %v283_v25 = vadd.f32 %v258_v21, %v238_v16  ;;  %v198_v14 = vmax.f32 %v135_v11, %v456_v48  ;;  %v243_v17 = vmul.f32 %v461_v52, %v475_v18 }
  0xcf   :  { %316 = vst [vmem:[#allocation2] sm:$0xff] %v307_v24  ;;  %v301_v34 = vadd.f32 %v292_v22, %v283_v25  ;;  %v297_v20 = vmul.f32 2.0, %v198_v14 }
  0xd0   :  { %v266_v41 = vpop.permute.xlu0 %265  ;;  %v250_v42 = vpop.permute.xlu1 %249 }
  0xd1   :  { %v310_v49 = vmax.f32 %v301_v34, 0.0  ;;  %v285_v50 = vadd.f32 %v266_v41, %v240_v33  ;;  %v281_v53 = vadd.f32 %v250_v42, %v236_v32 }
  0xd3   :  { %319 = vst [vmem:[#allocation2 + $0x18] sm:$0xff] %v310_v49  ;;  %v303_v57 = vadd.f32 %v294_v44, %v285_v50  ;;  %v299_v58 = vadd.f32 %v290_v38, %v281_v53 }
  0xd4   :  { %v274_v62 = vpop.permute.xlu0 %273  ;;  %v254_v63 = vpop.permute.xlu1 %253 }
  0xd5   :  { %v312_v0 = vmax.f32 %v303_v57, 0.0  ;;  %v308_v1 = vmax.f32 %v299_v58, 0.0  ;;  %v287_v2 = vadd.f32 %v274_v62, %v242_v55  ;;  %v282_v37 = vadd.f32 %v254_v63, %v237_v51 }
  0xd7   :  { %321 = vst [vmem:[#allocation2 + $0x28] sm:$0xff] %v312_v0  ;;  %317 = vst [vmem:[#allocation2 + $0x8] sm:$0xff] %v308_v1  ;;  %v305_v4 = vadd.f32 %v296_v59, %v287_v2  ;;  %v300_v30 = vadd.f32 %v291_v43, %v282_v37 }
  0xd8   :  { %v262_v7 = vpop.permute.xlu1 %261 }
  0xd9   :  { %v314_v8 = vmax.f32 %v305_v4, 0.0  ;;  %v309_v9 = vmax.f32 %v300_v30, 0.0  ;;  %v284_v10 = vadd.f32 %v262_v7, %v239_v60 }
  0xdb   :  { %323 = vst [vmem:[#allocation2 + $0x38] sm:$0xff] %v314_v8  ;;  %318 = vst [vmem:[#allocation2 + $0x10] sm:$0xff] %v309_v9  ;;  %v302_v39 = vadd.f32 %v293_v6, %v284_v10 }
  0xdc   :  { %v270_v13 = vpop.permute.xlu1 %269 }
  0xdd   :  { %v311_v15 = vmax.f32 %v302_v39, 0.0  ;;  %v286_v16 = vadd.f32 %v270_v13, %v241_v12 }
  0xdf   :  { %320 = vst [vmem:[#allocation2 + $0x20] sm:$0xff] %v311_v15  ;;  %v304_v47 = vadd.f32 %v295_v61, %v286_v16 }
  0xe0   :  { %v278_v19 = vpop.permute.xlu1 %277 }
  0xe1   :  { %v313_v21 = vmax.f32 %v304_v47, 0.0  ;;  %v288_v22 = vadd.f32 %v278_v19, %v243_v17 }
  0xe3   :  { %322 = vst [vmem:[#allocation2 + $0x30] sm:$0xff] %v313_v21  ;;  %v306_v5 = vadd.f32 %v297_v20, %v288_v22 }
  0xe5   :  { %v315_v23 = vmax.f32 %v306_v5, 0.0 }
  0xe7   :  { %324 = vst [vmem:[#allocation2 + $0x40] sm:$0xff] %v315_v23 }
  0xe8   :  { %368 = shalt.err (!%p365_p4)
}
  0xe9   :  { %s369_s4 = scalar_lea.hbm %s511_s2, 1152 }
  0xea   :  { %p370_p5 = scmp.ne.s32.totalorder %s511_s2, %s369_s4  ;;  %p373_p6 = scmp.lt.u32.totalorder %s369_s4, %s511_s2 }
  0xec   :  { %p375_p7 = pnand %p373_p6, %p370_p5 }
  0xee   :  { %378 = shalt.err (!%p375_p7)
}
  0xef   :  { %s386_s9 = smov 128   ;;  %s387_s10 = smov 8  }
  0xf0   :  { %336 = dma.vmem_to_hbm [thread:$0]  %s331_s28, 1152, %s511_s2, [#allocation3], %s386_s9, %s386_s9, %s387_s10  }
  0xf1   :  { %379 = dma.done.wait [#allocation3], 1152  }
  0xf2   :  { %380 = vsyncadd [#allocation3], 4294966144 }
  0xf3   :  { %340 = vsyncpa [#allocation3], 1 }

</bundles_post_ra>
